<compile_context>
chip_gen: v7x
topology: tpu7x:2x2x1
jax: 0.10.0
libtpu: 0.0.40
codegen_flags: <defaults>
</compile_context>

<pallas_src>
import jax
import jax.numpy as jnp
from jax.experimental import pallas as pl
from jax.experimental.pallas import tpu as pltpu


def _rope_kernel(trig_ref, x_ref, o_ref):
    # trig_ref: (TS, 2, rot) f32; trig[:, 0] = [cos|cos], trig[:, 1] = [-sin|sin]
    # x_ref/o_ref: (TS, QK, H, D)  -- q and/or k slab for one (seq-tile, batch)
    rot = trig_ref.shape[-1]
    r2 = rot // 2
    D = x_ref.shape[-1]

    trig = trig_ref[...]
    cos_cat = trig[:, 0, :][:, None, None, :]      # (TS, 1, 1, rot)
    sin_cat = trig[:, 1, :][:, None, None, :]      # (TS, 1, 1, rot) = [-sin|sin]

    x = x_ref[...]                                 # q/k only, V never touched
    x_rot = x[..., :rot].astype(jnp.float32)

    if rot % 128 == 0:
        # Lane-dense path: single unmasked full-width store; the half-swap is
        # a pltpu.roll on the XLU slot (idle in this HBM-bound kernel).
        x_swap = pltpu.roll(x_rot, shift=r2, axis=x_rot.ndim - 1)  # [x2 | x1]
        o_ref[..., :rot] = (x_rot * cos_cat +
                            x_swap * sin_cat).astype(o_ref.dtype)
    else:
        # rot < 128 lanes: two-half formulation (sub-lane stores unavoidable).
        x1 = x_rot[..., :r2]
        x2 = x_rot[..., r2:]
        cos = cos_cat[..., :r2]                    # cos
        sin = sin_cat[..., r2:]                    # +sin half of [-sin|sin]
        o_ref[..., :r2] = (x1 * cos - x2 * sin).astype(o_ref.dtype)
        o_ref[..., r2:rot] = (x1 * sin + x2 * cos).astype(o_ref.dtype)

    if rot < D:
        # Tail of headdim is untouched by RoPE; the output VMEM block must be
        # fully written before its HBM writeback.
        o_ref[..., rot:] = x[..., rot:]


def _pick_seq_tile(S, row_bytes, target_block_bytes):
    """Largest seq tile whose q+k block stays under the byte budget.

    TS is a leading block dim (not one of the last two), so the (8,128)
    constraint does not apply.  Prefer a divisor of S near the budget (all
    blocks full-sized); otherwise accept a non-divisor tile and let Pallas
    mask the partial last block instead of collapsing to TS = S.
    """
    max_rows = int(max(1, target_block_bytes // row_bytes))
    if S <= max_rows:
        return S
    for ts in range(max_rows, max(max_rows // 2, 1), -1):
        if S % ts == 0:
            return ts
    return max_rows


def apply_rotary_emb_qkv(qkv, cos, sin, *, target_block_bytes=4 << 20):
    """qkv: (B, S, 3, H, D); cos, sin: (rotary_seqlen, rotary_dim // 2).

    Applies rotary embedding to the first rotary_dim of q and k; V untouched.
    # TODO(synk): for decode shapes the true 1/3 HBM-traffic saving of the
    # V pass-through requires the caller to donate qkv at the jit boundary.
    """
    B, S, three, H, D = qkv.shape
    assert three == 3
    rotary_seqlen, r2 = cos.shape
    rot = 2 * r2
    assert rot <= D
    assert S <= rotary_seqlen and sin.shape == cos.shape

    # Single lane-dense f32 trig stream: (S, 2, rot) with [cos|cos] / [-sin|sin]
    # rows, instead of two half-empty (S, r2) arrays.
    cos_s = cos[:S].astype(jnp.float32)
    sin_s = sin[:S].astype(jnp.float32)
    trig = jnp.stack(
        [jnp.concatenate([cos_s, cos_s], axis=-1),
         jnp.concatenate([-sin_s, sin_s], axis=-1)],
        axis=1)                                             # (S, 2, rot)

    itemsize = jnp.dtype(qkv.dtype).itemsize
    TS = _pick_seq_tile(S, 2 * H * D * itemsize, target_block_bytes)
    n_s = pl.cdiv(S, TS)

    merge_qk = (n_s * B) >= 2
    if merge_qk:
        # One (TS, 2, H, D) block carries q and k together: half the grid
        # steps, double the DMA size, one trig tile reused per seq tile.
        grid = (n_s, B)
        qkv_spec = pl.BlockSpec((None, TS, 2, H, D),
                                lambda s, b: (b, s, 0, 0, 0))
        trig_spec = pl.BlockSpec((TS, 2, rot), lambda s, b: (s, 0, 0))
    else:
        # Decode-style (n_s * B == 1): split q/k into a third parallel grid
        # axis so a v7x megacore still has two blocks to shard across cores.
        grid = (n_s, B, 2)
        qkv_spec = pl.BlockSpec((None, TS, 1, H, D),
                                lambda s, b, qk: (b, s, qk, 0, 0))
        trig_spec = pl.BlockSpec((TS, 2, rot), lambda s, b, qk: (s, 0, 0))

    # Scoped-VMEM budget: double-buffered q/k input + double-buffered output
    # + double-buffered trig, plus headroom.  Capped at v7x's 64 MiB physical.
    block_bytes = TS * 2 * H * D * itemsize
    trig_bytes = TS * 2 * rot * 4
    vmem_limit = int(min(max(4 * block_bytes + 2 * trig_bytes + (4 << 20),
                             32 << 20),
                         64 << 20))

    return pl.pallas_call(
        _rope_kernel,
        out_shape=jax.ShapeDtypeStruct(qkv.shape, qkv.dtype),
        grid_spec=pltpu.PrefetchScalarGridSpec(
            num_scalar_prefetch=0,
            grid=grid,
            in_specs=[trig_spec, qkv_spec],
            out_specs=qkv_spec,
        ),
        # Alias qkv to the output: V blocks are never read or written, so they
        # retain their values ("in-place" semantics of the PyTorch module).
        input_output_aliases={1: 0},
        compiler_params=pltpu.CompilerParams(
            dimension_semantics=("parallel",) * len(grid),
            vmem_limit_bytes=vmem_limit),
    )(trig, qkv)


class RotaryEmbedding:
    """JAX port of flash_attn RotaryEmbedding (forward only)."""

    def __init__(self, dim: int, base: float = 10000.0):
        self.dim = dim
        self.inv_freq = 1.0 / (
            base ** (jnp.arange(0, dim, 2, dtype=jnp.float32) / dim))

    def __call__(self, qkv, seqlen_offset: int = 0):
        seqlen = qkv.shape[1] + seqlen_offset
        t = jnp.arange(seqlen, dtype=jnp.float32)
        freqs = jnp.outer(t, self.inv_freq)        # (seqlen, dim/2)
        cos = jnp.cos(freqs)                       # kept f32 (precision)
        sin = jnp.sin(freqs)
        return apply_rotary_emb_qkv(qkv, cos[seqlen_offset:],
                                    sin[seqlen_offset:])


def _reference(qkv, cos, sin):
    """Pure-JAX reference: rotary applied to q and k with f32 tables."""
    r2 = cos.shape[-1]
    rot = 2 * r2
    c = cos[None, :, None, :].astype(jnp.float32)
    s = sin[None, :, None, :].astype(jnp.float32)

    def rotate(x):
        xf = x.astype(jnp.float32)
        x1, x2 = xf[..., :r2], xf[..., r2:rot]
        return jnp.concatenate(
            [x1 * c - x2 * s, x1 * s + x2 * c, xf[..., rot:]],
            axis=-1).astype(x.dtype)

    q = rotate(qkv[:, :, 0])
    k = rotate(qkv[:, :, 1])
    v = qkv[:, :, 2]
    return jnp.stack([q, k, v], axis=2)


if __name__ == "__main__":
    key = jax.random.PRNGKey(0)

    configs = [
        # (B, S, H, D, rotary_dim)
        (2, 8, 4, 32, 16),    # partial rotary, sub-128 fallback path, q+k merged
        (1, 8, 4, 32, 32),    # full rotary, fallback path, split-qk grid path
        (2, 8, 4, 128, 128),  # full rotary, lane-dense roll path
        (2, 8, 4, 256, 128),  # partial rotary, roll path + tail pass-through
    ]
    for (B, S, H, D, rotary_dim) in configs:
        key, sub = jax.random.split(key)
        qkv = jax.random.normal(sub, (B, S, 3, H, D), dtype=jnp.float32)

        rope = RotaryEmbedding(rotary_dim)
        out = jax.block_until_ready(rope(qkv, seqlen_offset=0))

        t = jnp.arange(S, dtype=jnp.float32)
        freqs = jnp.outer(t, rope.inv_freq)
        ref = _reference(qkv, jnp.cos(freqs), jnp.sin(freqs))
        assert out.shape == qkv.shape and out.dtype == qkv.dtype
        assert jnp.allclose(out, ref, atol=1e-5, rtol=1e-5), (
            f"mismatch vs reference for config {(B, S, H, D, rotary_dim)}")

    print("KERNEL_OK")
</pallas_src>

<mosaic_0001>
module attributes {stable_mosaic.version = 11 : i64} {
  func.func @_rope_kernel(%arg0: i32, %arg1: i32, %arg2: memref<8x2x16xf32, #tpu.memory_space<vmem>>, %arg3: memref<1x8x2x4x32xf32, #tpu.memory_space<vmem>>, %arg4: memref<1x8x2x4x32xf32, #tpu.memory_space<vmem>>) attributes {dimension_semantics = [#tpu.dimension_semantics<parallel>, #tpu.dimension_semantics<parallel>], iteration_bounds = array<i64: 1, 2>, scalar_prefetch = 0 : i64, scratch_operands = 0 : i64, tpu.core_type = #tpu.core_type<tc>, window_params = [{transform_indices = @transform_0, window_bounds = array<i64: 8, 2, 16>}, {transform_indices = @transform_1, window_bounds = array<i64: 1, 8, 2, 4, 32>}, {transform_indices = @transform_2, window_bounds = array<i64: 1, 8, 2, 4, 32>}]} {
    %c0 = arith.constant 0 : index
    %c0_0 = arith.constant 0 : index
    %c0_1 = arith.constant 0 : index
    %0 = vector.load %arg2[%c0, %c0_0, %c0_1] : memref<8x2x16xf32, #tpu.memory_space<vmem>>, vector<8x2x16xf32>
    %1 = vector.extract_strided_slice %0 {offsets = [0, 0, 0], sizes = [8, 1, 16], strides = [1, 1, 1]} : vector<8x2x16xf32> to vector<8x1x16xf32>
    %2 = vector.shape_cast %1 : vector<8x1x16xf32> to vector<8x16xf32>
    %3 = vector.shape_cast %2 : vector<8x16xf32> to vector<8x1x1x16xf32>
    %4 = vector.extract_strided_slice %0 {offsets = [0, 1, 0], sizes = [8, 1, 16], strides = [1, 1, 1]} : vector<8x2x16xf32> to vector<8x1x16xf32>
    %5 = vector.shape_cast %4 : vector<8x1x16xf32> to vector<8x16xf32>
    %6 = vector.shape_cast %5 : vector<8x16xf32> to vector<8x1x1x16xf32>
    %c0_2 = arith.constant 0 : index
    %c0_3 = arith.constant 0 : index
    %c0_4 = arith.constant 0 : index
    %c0_5 = arith.constant 0 : index
    %c0_6 = arith.constant 0 : index
    %7 = vector.load %arg3[%c0_2, %c0_3, %c0_4, %c0_5, %c0_6] : memref<1x8x2x4x32xf32, #tpu.memory_space<vmem>>, vector<1x8x2x4x32xf32>
    %8 = vector.shape_cast %7 : vector<1x8x2x4x32xf32> to vector<8x2x4x32xf32>
    %9 = vector.extract_strided_slice %8 {offsets = [0, 0, 0, 0], sizes = [8, 2, 4, 16], strides = [1, 1, 1, 1]} : vector<8x2x4x32xf32> to vector<8x2x4x16xf32>
    %10 = vector.extract_strided_slice %9 {offsets = [0, 0, 0, 0], sizes = [8, 2, 4, 8], strides = [1, 1, 1, 1]} : vector<8x2x4x16xf32> to vector<8x2x4x8xf32>
    %11 = vector.extract_strided_slice %9 {offsets = [0, 0, 0, 8], sizes = [8, 2, 4, 8], strides = [1, 1, 1, 1]} : vector<8x2x4x16xf32> to vector<8x2x4x8xf32>
    %12 = vector.extract_strided_slice %3 {offsets = [0, 0, 0, 0], sizes = [8, 1, 1, 8], strides = [1, 1, 1, 1]} : vector<8x1x1x16xf32> to vector<8x1x1x8xf32>
    %13 = vector.extract_strided_slice %6 {offsets = [0, 0, 0, 8], sizes = [8, 1, 1, 8], strides = [1, 1, 1, 1]} : vector<8x1x1x16xf32> to vector<8x1x1x8xf32>
    %14 = vector.broadcast %12 : vector<8x1x1x8xf32> to vector<8x2x4x8xf32>
    %15 = arith.mulf %10, %14 : vector<8x2x4x8xf32>
    %16 = vector.broadcast %13 : vector<8x1x1x8xf32> to vector<8x2x4x8xf32>
    %17 = arith.mulf %11, %16 : vector<8x2x4x8xf32>
    %18 = arith.subf %15, %17 : vector<8x2x4x8xf32>
    %c0_7 = arith.constant 0 : index
    %c0_8 = arith.constant 0 : index
    %c0_9 = arith.constant 0 : index
    %c0_10 = arith.constant 0 : index
    %c0_11 = arith.constant 0 : index
    %19 = vector.load %arg4[%c0_7, %c0_8, %c0_9, %c0_10, %c0_11] : memref<1x8x2x4x32xf32, #tpu.memory_space<vmem>>, vector<1x8x2x4x8xf32>
    %20 = vector.shape_cast %19 : vector<1x8x2x4x8xf32> to vector<8x2x4x8xf32>
    %21 = vector.shape_cast %18 : vector<8x2x4x8xf32> to vector<1x8x2x4x8xf32>
    tpu.vector_store %arg4[%c0_7, %c0_8, %c0_9, %c0_10, %c0_11], %21 {strides = array<i32>} : memref<1x8x2x4x32xf32, #tpu.memory_space<vmem>>, vector<1x8x2x4x8xf32>,
    %22 = vector.broadcast %13 : vector<8x1x1x8xf32> to vector<8x2x4x8xf32>
    %23 = arith.mulf %10, %22 : vector<8x2x4x8xf32>
    %24 = vector.broadcast %12 : vector<8x1x1x8xf32> to vector<8x2x4x8xf32>
    %25 = arith.mulf %11, %24 : vector<8x2x4x8xf32>
    %26 = arith.addf %23, %25 : vector<8x2x4x8xf32>
    %c0_12 = arith.constant 0 : index
    %c0_13 = arith.constant 0 : index
    %c0_14 = arith.constant 0 : index
    %c0_15 = arith.constant 0 : index
    %c8 = arith.constant 8 : index
    %27 = vector.load %arg4[%c0_12, %c0_13, %c0_14, %c0_15, %c8] : memref<1x8x2x4x32xf32, #tpu.memory_space<vmem>>, vector<1x8x2x4x8xf32>
    %28 = vector.shape_cast %27 : vector<1x8x2x4x8xf32> to vector<8x2x4x8xf32>
    %29 = vector.shape_cast %26 : vector<8x2x4x8xf32> to vector<1x8x2x4x8xf32>
    tpu.vector_store %arg4[%c0_12, %c0_13, %c0_14, %c0_15, %c8], %29 {strides = array<i32>} : memref<1x8x2x4x32xf32, #tpu.memory_space<vmem>>, vector<1x8x2x4x8xf32>,
    %30 = vector.extract_strided_slice %8 {offsets = [0, 0, 0, 16], sizes = [8, 2, 4, 16], strides = [1, 1, 1, 1]} : vector<8x2x4x32xf32> to vector<8x2x4x16xf32>
    %c0_16 = arith.constant 0 : index
    %c0_17 = arith.constant 0 : index
    %c0_18 = arith.constant 0 : index
    %c0_19 = arith.constant 0 : index
    %c16 = arith.constant 16 : index
    %31 = vector.load %arg4[%c0_16, %c0_17, %c0_18, %c0_19, %c16] : memref<1x8x2x4x32xf32, #tpu.memory_space<vmem>>, vector<1x8x2x4x16xf32>
    %32 = vector.shape_cast %31 : vector<1x8x2x4x16xf32> to vector<8x2x4x16xf32>
    %33 = vector.shape_cast %30 : vector<8x2x4x16xf32> to vector<1x8x2x4x16xf32>
    tpu.vector_store %arg4[%c0_16, %c0_17, %c0_18, %c0_19, %c16], %33 {strides = array<i32>} : memref<1x8x2x4x32xf32, #tpu.memory_space<vmem>>, vector<1x8x2x4x16xf32>,
    return
  }
  func.func @transform_0(%arg0: i32, %arg1: i32) -> (i32, i32, i32) {
    %c0_i32 = arith.constant 0 : i32
    %c0_i32_0 = arith.constant 0 : i32
    %c0_i32_1 = arith.constant 0 : i32
    return %arg0, %c0_i32, %c0_i32_0 : i32, i32, i32
  }
  func.func @transform_1(%arg0: i32, %arg1: i32) -> (i32, i32, i32, i32, i32) {
    %c0_i32 = arith.constant 0 : i32
    %c0_i32_0 = arith.constant 0 : i32
    %c0_i32_1 = arith.constant 0 : i32
    %c0_i32_2 = arith.constant 0 : i32
    return %arg1, %arg0, %c0_i32, %c0_i32_0, %c0_i32_1 : i32, i32, i32, i32, i32
  }
  func.func @transform_2(%arg0: i32, %arg1: i32) -> (i32, i32, i32, i32, i32) {
    %c0_i32 = arith.constant 0 : i32
    %c0_i32_0 = arith.constant 0 : i32
    %c0_i32_1 = arith.constant 0 : i32
    %c0_i32_2 = arith.constant 0 : i32
    return %arg1, %arg0, %c0_i32, %c0_i32_0, %c0_i32_1 : i32, i32, i32, i32, i32
  }
}

</mosaic_0001>

<bundles_post_ra>
// kernel: tpu_custom_call.1
= control target key start
LH: loop header
LB: loop body
LE: loop exit
PB: predicated region body
PF: predicated region fallthrough
CT: control target
= control target key end

     0   :  { %7 = vsyncpa [#allocation3], 0  ;;  %s1625_s0 = inlined_call_operand.vmem [shape: f32[8,2,16], index: 0, kind: input, shape index: {}]   ;;  %s1626_s1 = inlined_call_operand.hbm [shape: f32[2,8,3,4,32], index: 1, kind: input, shape index: {}, may-alias: {1,2}]   ;;  %s1627_s2 = inlined_call_operand.hbm [shape: f32[2,8,3,4,32], index: 2, kind: output, shape index: {}, may-alias: {1,2}]  }
   0x1   :  { %9 = vsyncpa [#allocation3 + $0x1], 0 }
   0x2   :  { %10 = vsyncpa [#allocation4], 0 }
   0x3   :  { %12 = vsyncpa [#allocation4 + $0x1], 0  ;;  %s1058_s9 = smov 0   ;;  %s1060_s10 = smov 0  }
   0x4   :  { %s1062_s11 = smov 0   ;;  %s1064_s12 = smov 0  }
   0x5   :  { %s1066_s13 = smov 0   ;;  %s1068_s14 = smov 0  }
   0x6 LB: > { %s869_s15 = sadd.s32 4294967295, %s1026_s14   ;;  %s870_s16 = sadd.s32 4294967294, %s1026_s14   ;;  %s1026_s14 = sphi %s1068_s14, %s18_s14   ;;  %s1022_s13 = sphi %s1066_s13, %s1636_s13   ;;  %s1018_s12 = sphi %s1064_s12, %s1635_s12   ;;  %s1014_s11 = sphi %s1062_s11, %s1634_s11   ;;  %s1010_s10 = sphi %s1060_s10, %s1633_s10   ;;  %s1006_s9 = sphi %s1058_s9, %s1632_s9  }
   0x7   : > { %s27_s17 = sadd.s32 1, %s1022_s13  ;;  %s65_s18 = sadd.s32 1, %s1014_s11 }
   0x8   : > { %p28_p0 = scmp.ge.s32.totalorder %s27_s17, 2  ;;  %p72_p1 = scmp.ne.s32.totalorder %s1014_s11, %s1010_s10 }
   0x9   : > { %p73_p2 = scmp.eq.s32.totalorder %s1026_s14, 0  ;;  %p78_p3 = scmp.ne.s32.totalorder %s1010_s10, %s1006_s9 }
   0xa   : > { %s1638_s17 = smov (%p28_p0, %s27_s17), 0  ;;  %p79_p5 = scmp.eq.s32.totalorder %s869_s15, 0 }
   0xb   : > { %p1099_p4 = por %p73_p2, %p72_p1  ;;  %s60_s20 = ssub.s32 %s1022_s13, %s1638_s17 }
   0xc   : > { %p104_p6 = scmp.eq.s32.totalorder %s869_s15, 1  ;;  %p63_p7 = scmp.eq.s32.totalorder %s60_s20, 0 }
   0xd   : > { %p1105_p8 = por %p79_p5, %p78_p3  ;;  %p110_p10 = scmp.eq.s32.totalorder %s870_s16, 1 }
   0xe   : > { %p1109_p9 = por %p104_p6, %p72_p1  ;;  %p873_p12 = scmp.ge.s32.totalorder %s1026_s14, 2 }
   0xf   : > { %s1114_s23 = scalar_select %p63_p7, %s1014_s11, %s65_s18  }
  0x10   : > { %p1116_p11 = por %p110_p10, %p78_p3  ;;  %135 = sbr.rel (%p873_p12) target bundleno = 37 (0x25), region = 20 }
  0x17   : > { %s139_s25 = sand.u32 1, %s1014_s11   ;;  %s885_s26 = smul.u32 1536, %s1022_s13 }
  0x18   : > { %s874_s27 = sshll.u32 %s139_s25, 6  ;;  %s1028_s7 = smov 192  }
  0x19   : > { %s152_s30 = scalar_lea.hbm %s1626_s1, %s885_s26  ;;  %s143_s4 = scalar_lea.vmem [#allocation2], %s874_s27 }
  0x1a   : > { %s887_s3 = scalar_select %p1099_p4, [#allocation0], [#allocation10] }
  0x1b   : > { %s165_s5 = sshll.u32 %s143_s4, 4  ;;  %888 = sst [smem:[#allocation7]] (%p1099_p4), %s1028_s7  ;;  %s166_s5 = int_to_ptr.vmem [resolvable:$true] %s165_s5 }
  0x1c   : > { %s157_s6 = sld [smem:[%s887_s3]]   ;;  %s1029_s8 = smov 128  }
  0x1d   : > { %889 = sst [smem:[#allocation7 + $0x1]] (%p1099_p4), %s1029_s8  ;;  %s1030_s15 = smov 2  }
  0x1e   : > { %890 = sst [smem:[#allocation7 + $0x2]] (%p1099_p4), %s1030_s15  ;;  %s1031_s16 = smov 64  }
  0x1f   : > { %891 = sst [smem:[#allocation7 + $0x3]] (%p1099_p4), %s1031_s16  ;;  %s1032_s20 = smov 4  }
  0x20   : > { %892 = sst [smem:[#allocation7 + $0x4]] (%p1099_p4), %s1031_s16  ;;  %s140_s27 = scalar_lea.sflag [#allocation3], %s139_s25 }
  0x21   : > { %893 = sst [smem:[#allocation7 + $0x5]] (%p1099_p4), %s1032_s20  ;;  %s1033_s28 = smov [#allocation6]  }
  0x22   : > { %s876_s18 = sshll.u32 %s157_s6, 26 }
  0x23   : > { %s877_s26 = sadd.s32 134217728, %s876_s18 }
  0x24   : > { %894 = dma.general (%p1099_p4), %s152_s30, 1024, %s166_s5, %s140_s27, %s1033_s28, [#allocation7], %s877_s26, 0  }
  0x25 PF: > { %p878_p13 = scmp.ge.s32.totalorder %s1026_s14, 1  ;;  %p186_p0 = scmp.lt.s32.totalorder %s1026_s14, 3 }
  0x27   : > { %p187_p1 = pnand %p878_p13, %p186_p0 }
  0x28   : > { %s1147_s29 = sand.u32 (!%p187_p1), 1, %s1010_s10  }
  0x29   : > { %190 = sbr.rel (%p187_p1) target bundleno = 445 (0x1bd), region = 28  ;;  %s879_s3 = sshll.u32 (!%p187_p1), %s1147_s29, 6 }
  0x2a   : > { %s193_s4 = scalar_lea.sflag (!%p187_p1), [#allocation3], %s1147_s29  ;;  %s1153_s25 = scalar_lea.vmem (!%p187_p1), [#allocation2], %s879_s3 }
  0x30   : > { %997 = dma.done.wait (%p1105_p8), %s193_s4, 1024  }
  0x31   : > { %999 = vsyncadd (%p1105_p8), %s193_s4, 4294966272  ;;  %v254_v0 = vlaneseq  ;;  %v230_v3 = vld [vmem:[%s1625_s0] sm:$0x3]  ;;  %v231_v4 = vld [vmem:[%s1625_s0 + $0x2] sm:$0x3]  ;;  %s1034_s16 = smov 8  }
  0x32   : > { %v232_v5 = vld [vmem:[%s1625_s0 + $0x4] sm:$0x3]  ;;  %v233_v8 = vld [vmem:[%s1625_s0 + $0x6] sm:$0x3]  ;;  %v234_v11 = vld [vmem:[%s1625_s0 + $0x8] sm:$0x3] }
  0x33   : > { %v255_v1 = vshrl.u32 %v254_v0, 7  ;;  %v235_v12 = vld [vmem:[%s1625_s0 + $0xa] sm:$0x3]  ;;  %v236_v15 = vld [vmem:[%s1625_s0 + $0xc] sm:$0x3]  ;;  %s1035_s5 = smov 120  }
  0x34   : > { %v237_v16 = vld [vmem:[%s1625_s0 + $0xe] sm:$0x3]  ;;  %v1241_v28 = vld [vmem:[%s1153_s25 + $0x4] sm:$0xf]  ;;  %v1244_v29 = vld [vmem:[%s1153_s25] sm:$0xf] }
  0x35   : > { %v256_v2 = vsub.s32 0, %v255_v1  ;;  %v304_v19 = vsub.s32 1, %v255_v1  ;;  %v1257_v36 = vld [vmem:[%s1153_s25 + $0x8] sm:$0xf]  ;;  %v1260_v37 = vld [vmem:[%s1153_s25 + $0xc] sm:$0xf] }
  0x36   : > { %v1265_v39 = vld [vmem:[%s1153_s25 + $0x10] sm:$0xf]  ;;  %v1268_v40 = vld [vmem:[%s1153_s25 + $0x14] sm:$0xf]  ;;  %v1277_v46 = vld [vmem:[%s1153_s25 + $0x18] sm:$0xf] }
  0x37   : > { %v1168_v6 = vrot.slane %v230_v3, %v256_v2  ;;  %v1170_v7 = vrot.slane %v232_v5, %v256_v2  ;;  %v1177_v9 = vrot.slane %v231_v4, %v256_v2  ;;  %v1181_v10 = vrot.slane %v233_v8, %v256_v2  ;;  %v1280_v47 = vld [vmem:[%s1153_s25 + $0x1c] sm:$0xf]  ;;  %v1287_v52 = vld [vmem:[%s1153_s25 + $0x20] sm:$0xf]  ;;  %v1290_v53 = vld [vmem:[%s1153_s25 + $0x24] sm:$0xf] }
  0x38   : > { %v1193_v13 = vrot.slane %v234_v11, %v256_v2  ;;  %v1195_v14 = vrot.slane %v235_v12, %v256_v2  ;;  %v1207_v17 = vrot.slane %v236_v15, %v256_v2  ;;  %v1209_v18 = vrot.slane %v237_v16, %v256_v2  ;;  %v1297_v58 = vld [vmem:[%s1153_s25 + $0x28] sm:$0xf]  ;;  %v1300_v59 = vld [vmem:[%s1153_s25 + $0x2c] sm:$0xf]  ;;  %v1311_v0 = vld [vmem:[%s1153_s25 + $0x30] sm:$0xf] }
  0x39   : > { %503 = vrot.lane.b32.xlu0 %v1168_v6, %s1034_s16  ;;  %507 = vrot.lane.b32.xlu1 %v1170_v7, %s1034_s16  ;;  %v1215_v20 = vrot.slane %v231_v4, %v304_v19  ;;  %v305_v21 = vrot.slane %v230_v3, %v304_v19  ;;  %v1220_v22 = vrot.slane %v233_v8, %v304_v19  ;;  %v1314_v1 = vld [vmem:[%s1153_s25 + $0x34] sm:$0xf]  ;;  %v1325_v8 = vld [vmem:[%s1153_s25 + $0x38] sm:$0xf]  ;;  %vm430_vm0 = vcmask 60416  }
  0x3a   : > { %v1222_v23 = vrot.slane %v232_v5, %v304_v19  ;;  %v1228_v24 = vrot.slane %v235_v12, %v304_v19  ;;  %v1230_v25 = vrot.slane %v234_v11, %v304_v19  ;;  %v1236_v26 = vrot.slane %v237_v16, %v304_v19  ;;  %v1328_v11 = vld [vmem:[%s1153_s25 + $0x3c] sm:$0xf]  ;;  %s1360_s25 = scalar_lea.vmem [#allocation5], %s879_s3  ;;  %s722_s3 = scalar_lea.sflag [#allocation4], %s1147_s29 }
  0x3b   : > { %v1238_v27 = vrot.slane %v236_v15, %v304_v19  ;;  %v335_v30 = vmul.f32 %v305_v21, %v1241_v28  ;;  %v334_v31 = vmul.f32 %v305_v21, %v1244_v29  ;;  %vm687_vm1 = vcmask 126016  }
  0x3c   : > { %vm704_vm2 = vcmask 257152  }
  0x3d   : > { %505 = vrot.lane.b32.xlu0 %v1177_v9, %s1034_s16  ;;  %509 = vrot.lane.b32.xlu1 %v1181_v10, %s1034_s16 }
  0x41   : > { %511 = vrot.lane.b32.xlu0 %v1193_v13, %s1034_s16  ;;  %513 = vrot.lane.b32.xlu1 %v1195_v14, %s1034_s16 }
  0x45   : > { %515 = vrot.lane.b32.xlu0 %v1207_v17, %s1034_s16  ;;  %517 = vrot.lane.b32.xlu1 %v1209_v18, %s1034_s16 }
  0x49   : > { %457 = vrot.lane.b32.xlu1 %v1215_v20, %s1035_s5  ;;  %455 = vrot.lane.b32.xlu0 %v305_v21, %s1035_s5 }
  0x4d   : > { %461 = vrot.lane.b32.xlu1 %v1220_v22, %s1035_s5  ;;  %459 = vrot.lane.b32.xlu0 %v1222_v23, %s1035_s5 }
  0x51   : > { %465 = vrot.lane.b32.xlu1 %v1228_v24, %s1035_s5  ;;  %463 = vrot.lane.b32.xlu0 %v1230_v25, %s1035_s5 }
  0x55   : > { %469 = vrot.lane.b32.xlu1 %v1236_v26, %s1035_s5  ;;  %467 = vrot.lane.b32.xlu0 %v1238_v27, %s1035_s5 }
  0x59   : > { %368 = vrot.lane.b32.xlu1 %v335_v30, %s1035_s5  ;;  %366 = vrot.lane.b32.xlu0 %v334_v31, %s1035_s5  ;;  %v287_v31 = vmul.f32 %v1168_v6, %v1241_v28 }
  0xab   : > { %v504_v32 = vpop.permute.xlu0 %503  ;;  %v508_v33 = vpop.permute.xlu1 %507 }
  0xac   : > { %v527_v34 = vmul.f32 %v504_v32, %v1244_v29  ;;  %v528_v35 = vmul.f32 %v504_v32, %v1241_v28  ;;  %v531_v44 = vmul.f32 %v508_v33, %v1265_v39  ;;  %v532_v45 = vmul.f32 %v508_v33, %v1268_v40 }
  0xad   : > { %v286_v32 = vmul.f32 %v1168_v6, %v1244_v29  ;;  %v337_v33 = vmul.f32 %v1215_v20, %v1260_v37  ;;  %v339_v6 = vmul.f32 %v1222_v23, %v1268_v40 }
  0xae   : > { %561 = vrot.lane.b32.xlu1 %v528_v35, %s1035_s5  ;;  %559 = vrot.lane.b32.xlu0 %v527_v34, %s1035_s5  ;;  %v336_v34 = vmul.f32 %v1215_v20, %v1257_v36  ;;  %v341_v20 = vmul.f32 %v1220_v22, %v1280_v47 }
  0xaf   : > { %v506_v38 = vpop.permute.xlu0 %505  ;;  %v510_v41 = vpop.permute.xlu1 %509 }
  0xb0   : > { %v529_v42 = vmul.f32 %v506_v38, %v1257_v36  ;;  %v530_v43 = vmul.f32 %v506_v38, %v1260_v37  ;;  %v533_v50 = vmul.f32 %v510_v41, %v1277_v46  ;;  %v534_v51 = vmul.f32 %v510_v41, %v1280_v47 }
  0xb2   : > { %565 = vrot.lane.b32.xlu1 %v530_v43, %s1035_s5  ;;  %563 = vrot.lane.b32.xlu0 %v529_v42, %s1035_s5  ;;  %v338_v43 = vmul.f32 %v1222_v23, %v1265_v39  ;;  %v343_v23 = vmul.f32 %v1230_v25, %v1290_v53 }
  0xb3   : > { %v512_v48 = vpop.permute.xlu0 %511  ;;  %v514_v49 = vpop.permute.xlu1 %513 }
  0xb4   : > { %v535_v56 = vmul.f32 %v512_v48, %v1287_v52  ;;  %v536_v57 = vmul.f32 %v512_v48, %v1290_v53  ;;  %v537_v62 = vmul.f32 %v514_v49, %v1297_v58  ;;  %v538_v63 = vmul.f32 %v514_v49, %v1300_v59 }
  0xb5   : > { %v345_v48 = vmul.f32 %v1228_v24, %v1300_v59  ;;  %v347_v49 = vmul.f32 %v1238_v27, %v1314_v1 }
  0xb6   : > { %569 = vrot.lane.b32.xlu1 %v532_v45, %s1035_s5  ;;  %567 = vrot.lane.b32.xlu0 %v531_v44, %s1035_s5  ;;  %v340_v44 = vmul.f32 %v1220_v22, %v1277_v46  ;;  %v342_v45 = vmul.f32 %v1230_v25, %v1287_v52  ;;  %v344_v22 = vmul.f32 %v1228_v24, %v1297_v58 }
  0xb7   : > { %v516_v54 = vpop.permute.xlu0 %515  ;;  %v518_v55 = vpop.permute.xlu1 %517  ;;  %v346_v25 = vmul.f32 %v1238_v27, %v1311_v0  ;;  %v348_v24 = vmul.f32 %v1236_v26, %v1325_v8 }
  0xb8   : > { %v539_v4 = vmul.f32 %v516_v54, %v1311_v0  ;;  %v540_v5 = vmul.f32 %v516_v54, %v1314_v1  ;;  %v541_v16 = vmul.f32 %v518_v55, %v1325_v8  ;;  %v542_v19 = vmul.f32 %v518_v55, %v1328_v11 }
  0xba   : > { %573 = vrot.lane.b32.xlu1 %v534_v51, %s1035_s5  ;;  %571 = vrot.lane.b32.xlu0 %v533_v50, %s1035_s5  ;;  %v349_v50 = vmul.f32 %v1236_v26, %v1328_v11 }
  0xbb   : > { %v1302_v60 = vpop.permute.xlu1 %457  ;;  %v1304_v61 = vpop.permute.xlu0 %455 }
  0xbc   : > { %v479_v51 = vmul.f32 %v1304_v61, %v1244_v29  ;;  %v480_v27 = vmul.f32 %v1304_v61, %v1241_v28  ;;  %v482_v26 = vmul.f32 %v1302_v60, %v1260_v37 }
  0xbe   : > { %577 = vrot.lane.b32.xlu1 %v536_v57, %s1035_s5  ;;  %575 = vrot.lane.b32.xlu0 %v535_v56, %s1035_s5 }
  0xbf   : > { %v1316_v2 = vpop.permute.xlu1 %461  ;;  %v1318_v3 = vpop.permute.xlu0 %459 }
  0xc0   : > { %v483_v61 = vmul.f32 %v1318_v3, %v1265_v39 }
  0xc2   : > { %581 = vrot.lane.b32.xlu1 %v538_v63, %s1035_s5  ;;  %579 = vrot.lane.b32.xlu0 %v537_v62, %s1035_s5  ;;  %v481_v62 = vmul.f32 %v1302_v60, %v1257_v36 }
  0xc3   : > { %v1330_v12 = vpop.permute.xlu1 %465  ;;  %v1332_v15 = vpop.permute.xlu0 %463 }
  0xc6   : > { %585 = vrot.lane.b32.xlu1 %v540_v5, %s1035_s5  ;;  %583 = vrot.lane.b32.xlu0 %v539_v4, %s1035_s5 }
  0xc7   : > { %v1338_v21 = vpop.permute.xlu1 %469  ;;  %v1340_v30 = vpop.permute.xlu0 %467 }
  0xca   : > { %589 = vrot.lane.b32.xlu1 %v542_v19, %s1035_s5  ;;  %587 = vrot.lane.b32.xlu0 %v541_v16, %s1035_s5  ;;  %v484_v19 = vmul.f32 %v1318_v3, %v1268_v40 }
  0xcb   : > { %v369_v35 = vpop.permute.xlu1 %368  ;;  %v367_v38 = vpop.permute.xlu0 %366 }
  0xcc   : > { %v415_v41 = vsub.f32 %v287_v31, %v369_v35  ;;  %v414_v42 = vsub.f32 %v286_v32, %v367_v38  ;;  %v486_v35 = vmul.f32 %v1316_v2, %v1280_v47 }
  0xce   : > { %372 = vrot.lane.b32.xlu1 %v337_v33, %s1035_s5  ;;  %370 = vrot.lane.b32.xlu0 %v336_v34, %s1035_s5  ;;  %432 = vst.msk [vmem:[%s1360_s25 + $0x4] sm:$0xf] %vm430_vm0, %v415_v41  ;;  %431 = vst.msk [vmem:[%s1360_s25] sm:$0xf] %vm430_vm0, %v414_v42  ;;  %v485_v34 = vmul.f32 %v1316_v2, %v1277_v46 }
  0xd2   : > { %376 = vrot.lane.b32.xlu1 %v339_v6, %s1035_s5  ;;  %374 = vrot.lane.b32.xlu0 %v338_v43, %s1035_s5  ;;  %v487_v6 = vmul.f32 %v1332_v15, %v1287_v52  ;;  %v488_v43 = vmul.f32 %v1332_v15, %v1290_v53 }
  0xd6   : > { %380 = vrot.lane.b32.xlu1 %v341_v20, %s1035_s5  ;;  %378 = vrot.lane.b32.xlu0 %v340_v44, %s1035_s5 }
  0xda   : > { %384 = vrot.lane.b32.xlu1 %v343_v23, %s1035_s5  ;;  %382 = vrot.lane.b32.xlu0 %v342_v45, %s1035_s5  ;;  %v489_v45 = vmul.f32 %v1330_v12, %v1297_v58 }
  0xde   : > { %388 = vrot.lane.b32.xlu1 %v345_v48, %s1035_s5  ;;  %386 = vrot.lane.b32.xlu0 %v344_v22, %s1035_s5  ;;  %v490_v48 = vmul.f32 %v1330_v12, %v1300_v59 }
  0xe2   : > { %392 = vrot.lane.b32.xlu1 %v347_v49, %s1035_s5  ;;  %390 = vrot.lane.b32.xlu0 %v346_v25, %s1035_s5 }
  0xe6   : > { %396 = vrot.lane.b32.xlu1 %v349_v50, %s1035_s5  ;;  %394 = vrot.lane.b32.xlu0 %v348_v24, %s1035_s5  ;;  %v491_v50 = vmul.f32 %v1340_v30, %v1311_v0  ;;  %v492_v24 = vmul.f32 %v1340_v30, %v1314_v1 }
 0x120   : > { %v562_v54 = vpop.permute.xlu1 %561  ;;  %v560_v55 = vpop.permute.xlu0 %559 }
 0x121   : > { %v608_v56 = vadd.f32 %v562_v54, %v480_v27  ;;  %v607_v57 = vadd.f32 %v560_v55, %v479_v51  ;;  %v493_v55 = vmul.f32 %v1338_v21, %v1325_v8 }
 0x123   : > { %641 = vrot.lane.b32.xlu1 %v608_v56, %s1034_s16  ;;  %639 = vrot.lane.b32.xlu0 %v607_v57, %s1034_s16  ;;  %v494_v56 = vmul.f32 %v1338_v21, %v1328_v11 }
 0x124   : > { %v566_v63 = vpop.permute.xlu1 %565  ;;  %v564_v4 = vpop.permute.xlu0 %563 }
 0x125   : > { %v610_v5 = vadd.f32 %v566_v63, %v482_v26  ;;  %v609_v16 = vadd.f32 %v564_v4, %v481_v62  ;;  %v289_v63 = vmul.f32 %v1177_v9, %v1260_v37  ;;  %v288_v4 = vmul.f32 %v1177_v9, %v1257_v36 }
 0x127   : > { %645 = vrot.lane.b32.xlu1 %v610_v5, %s1034_s16  ;;  %643 = vrot.lane.b32.xlu0 %v609_v16, %s1034_s16 }
 0x128   : > { %v570_v31 = vpop.permute.xlu1 %569  ;;  %v568_v60 = vpop.permute.xlu0 %567 }
 0x129   : > { %v612_v32 = vadd.f32 %v570_v31, %v484_v19  ;;  %v611_v33 = vadd.f32 %v568_v60, %v483_v61  ;;  %v291_v19 = vmul.f32 %v1170_v7, %v1268_v40  ;;  %v290_v31 = vmul.f32 %v1170_v7, %v1265_v39 }
 0x12b   : > { %649 = vrot.lane.b32.xlu1 %v612_v32, %s1034_s16  ;;  %647 = vrot.lane.b32.xlu0 %v611_v33, %s1034_s16 }
 0x12c   : > { %v574_v38 = vpop.permute.xlu1 %573  ;;  %v572_v3 = vpop.permute.xlu0 %571 }
 0x12d   : > { %v614_v41 = vadd.f32 %v574_v38, %v486_v35  ;;  %v613_v42 = vadd.f32 %v572_v3, %v485_v34  ;;  %v293_v34 = vmul.f32 %v1181_v10, %v1280_v47  ;;  %v292_v35 = vmul.f32 %v1181_v10, %v1277_v46 }
 0x12f   : > { %653 = vrot.lane.b32.xlu1 %v614_v41, %s1034_s16  ;;  %651 = vrot.lane.b32.xlu0 %v613_v42, %s1034_s16  ;;  %v295_v42 = vmul.f32 %v1193_v13, %v1290_v53 }
 0x130   : > { %v578_v20 = vpop.permute.xlu1 %577  ;;  %v576_v2 = vpop.permute.xlu0 %575 }
 0x131   : > { %v616_v44 = vadd.f32 %v578_v20, %v488_v43  ;;  %v615_v23 = vadd.f32 %v576_v2, %v487_v6  ;;  %v294_v6 = vmul.f32 %v1193_v13, %v1287_v52 }
 0x133   : > { %657 = vrot.lane.b32.xlu1 %v616_v44, %s1034_s16  ;;  %655 = vrot.lane.b32.xlu0 %v615_v23, %s1034_s16  ;;  %v297_v44 = vmul.f32 %v1195_v14, %v1300_v59  ;;  %v296_v23 = vmul.f32 %v1195_v14, %v1297_v58 }
 0x134   : > { %v582_v22 = vpop.permute.xlu1 %581  ;;  %v580_v15 = vpop.permute.xlu0 %579 }
 0x135   : > { %v618_v49 = vadd.f32 %v582_v22, %v490_v48  ;;  %v617_v25 = vadd.f32 %v580_v15, %v489_v45  ;;  %v299_v15 = vmul.f32 %v1207_v17, %v1314_v1 }
 0x137   : > { %661 = vrot.lane.b32.xlu1 %v618_v49, %s1034_s16  ;;  %659 = vrot.lane.b32.xlu0 %v617_v25, %s1034_s16  ;;  %v298_v49 = vmul.f32 %v1207_v17, %v1311_v0 }
 0x138   : > { %v586_v51 = vpop.permute.xlu1 %585  ;;  %v584_v12 = vpop.permute.xlu0 %583 }
 0x139   : > { %v620_v27 = vadd.f32 %v586_v51, %v492_v24  ;;  %v619_v54 = vadd.f32 %v584_v12, %v491_v50  ;;  %v301_v51 = vmul.f32 %v1209_v18, %v1328_v11  ;;  %v300_v12 = vmul.f32 %v1209_v18, %v1325_v8 }
 0x13b   : > { %665 = vrot.lane.b32.xlu1 %v620_v27, %s1034_s16  ;;  %663 = vrot.lane.b32.xlu0 %v619_v54, %s1034_s16 }
 0x13c   : > { %v590_v30 = vpop.permute.xlu1 %589  ;;  %v588_v57 = vpop.permute.xlu0 %587 }
 0x13d   : > { %v622_v62 = vadd.f32 %v590_v30, %v494_v56  ;;  %v621_v26 = vadd.f32 %v588_v57, %v493_v55 }
 0x13f   : > { %669 = vrot.lane.b32.xlu1 %v622_v62, %s1034_s16  ;;  %667 = vrot.lane.b32.xlu0 %v621_v26, %s1034_s16 }
 0x140   : > { %v373_v21 = vpop.permute.xlu1 %372  ;;  %v371_v5 = vpop.permute.xlu0 %370 }
 0x141   : > { %v417_v16 = vsub.f32 %v289_v63, %v373_v21  ;;  %v416_v61 = vsub.f32 %v288_v4, %v371_v5 }
 0x143   : > { %434 = vst.msk [vmem:[%s1360_s25 + $0xc] sm:$0xf] %vm430_vm0, %v417_v16  ;;  %433 = vst.msk [vmem:[%s1360_s25 + $0x8] sm:$0xf] %vm430_vm0, %v416_v61 }
 0x144   : > { %v377_v9 = vpop.permute.xlu1 %376  ;;  %v375_v60 = vpop.permute.xlu0 %374 }
 0x145   : > { %v419_v32 = vsub.f32 %v291_v19, %v377_v9  ;;  %v418_v33 = vsub.f32 %v290_v31, %v375_v60 }
 0x147   : > { %436 = vst.msk [vmem:[%s1360_s25 + $0x14] sm:$0xf] %vm430_vm0, %v419_v32  ;;  %435 = vst.msk [vmem:[%s1360_s25 + $0x10] sm:$0xf] %vm430_vm0, %v418_v33 }
 0x148   : > { %v381_v7 = vpop.permute.xlu1 %380  ;;  %v379_v38 = vpop.permute.xlu0 %378 }
 0x149   : > { %v421_v3 = vsub.f32 %v293_v34, %v381_v7  ;;  %v420_v41 = vsub.f32 %v292_v35, %v379_v38 }
 0x14b   : > { %438 = vst.msk [vmem:[%s1360_s25 + $0x1c] sm:$0xf] %vm430_vm0, %v421_v3  ;;  %437 = vst.msk [vmem:[%s1360_s25 + $0x18] sm:$0xf] %vm430_vm0, %v420_v41 }
 0x14c   : > { %v385_v10 = vpop.permute.xlu1 %384  ;;  %v383_v43 = vpop.permute.xlu0 %382 }
 0x14d   : > { %v423_v20 = vsub.f32 %v295_v42, %v385_v10  ;;  %v422_v2 = vsub.f32 %v294_v6, %v383_v43 }
 0x14f   : > { %440 = vst.msk [vmem:[%s1360_s25 + $0x24] sm:$0xf] %vm430_vm0, %v423_v20  ;;  %439 = vst.msk [vmem:[%s1360_s25 + $0x20] sm:$0xf] %vm430_vm0, %v422_v2 }
 0x150   : > { %v389_v13 = vpop.permute.xlu1 %388  ;;  %v387_v45 = vpop.permute.xlu0 %386 }
 0x151   : > { %v425_v48 = vsub.f32 %v297_v44, %v389_v13  ;;  %v424_v22 = vsub.f32 %v296_v23, %v387_v45 }
 0x153   : > { %442 = vst.msk [vmem:[%s1360_s25 + $0x2c] sm:$0xf] %vm430_vm0, %v425_v48  ;;  %441 = vst.msk [vmem:[%s1360_s25 + $0x28] sm:$0xf] %vm430_vm0, %v424_v22 }
 0x154   : > { %v393_v14 = vpop.permute.xlu1 %392  ;;  %v391_v25 = vpop.permute.xlu0 %390 }
 0x155   : > { %v427_v50 = vsub.f32 %v299_v15, %v393_v14  ;;  %v426_v24 = vsub.f32 %v298_v49, %v391_v25 }
 0x157   : > { %444 = vst.msk [vmem:[%s1360_s25 + $0x34] sm:$0xf] %vm430_vm0, %v427_v50  ;;  %443 = vst.msk [vmem:[%s1360_s25 + $0x30] sm:$0xf] %vm430_vm0, %v426_v24 }
 0x158   : > { %v397_v17 = vpop.permute.xlu1 %396  ;;  %v395_v27 = vpop.permute.xlu0 %394 }
 0x159   : > { %v429_v54 = vsub.f32 %v301_v51, %v397_v17  ;;  %v428_v55 = vsub.f32 %v300_v12, %v395_v27 }
 0x15b   : > { %446 = vst.msk [vmem:[%s1360_s25 + $0x3c] sm:$0xf] %vm430_vm0, %v429_v54  ;;  %445 = vst.msk [vmem:[%s1360_s25 + $0x38] sm:$0xf] %vm430_vm0, %v428_v55 }
 0x195   : > { %v642_v18 = vpop.permute.xlu1 %641  ;;  %v640_v56 = vpop.permute.xlu0 %639 }
 0x196   : > { %689 = vst.msk [vmem:[%s1360_s25 + $0x4] sm:$0xf] %vm687_vm1, %v642_v18  ;;  %688 = vst.msk [vmem:[%s1360_s25] sm:$0xf] %vm687_vm1, %v640_v56 }
 0x197   : > { %706 = vst.msk [vmem:[%s1360_s25 + $0x4] sm:$0xf] %vm704_vm2, %v1241_v28  ;;  %705 = vst.msk [vmem:[%s1360_s25] sm:$0xf] %vm704_vm2, %v1244_v29 }
 0x199   : > { %v646_v30 = vpop.permute.xlu1 %645  ;;  %v644_v57 = vpop.permute.xlu0 %643 }
 0x19a   : > { %691 = vst.msk [vmem:[%s1360_s25 + $0xc] sm:$0xf] %vm687_vm1, %v646_v30  ;;  %690 = vst.msk [vmem:[%s1360_s25 + $0x8] sm:$0xf] %vm687_vm1, %v644_v57 }
 0x19b   : > { %708 = vst.msk [vmem:[%s1360_s25 + $0xc] sm:$0xf] %vm704_vm2, %v1260_v37  ;;  %707 = vst.msk [vmem:[%s1360_s25 + $0x8] sm:$0xf] %vm704_vm2, %v1257_v36 }
 0x19d   : > { %v650_v28 = vpop.permute.xlu1 %649  ;;  %v648_v29 = vpop.permute.xlu0 %647 }
 0x19e   : > { %693 = vst.msk [vmem:[%s1360_s25 + $0x14] sm:$0xf] %vm687_vm1, %v650_v28  ;;  %692 = vst.msk [vmem:[%s1360_s25 + $0x10] sm:$0xf] %vm687_vm1, %v648_v29 }
 0x19f   : > { %710 = vst.msk [vmem:[%s1360_s25 + $0x14] sm:$0xf] %vm704_vm2, %v1268_v40  ;;  %709 = vst.msk [vmem:[%s1360_s25 + $0x10] sm:$0xf] %vm704_vm2, %v1265_v39 }
 0x1a1   : > { %v654_v37 = vpop.permute.xlu1 %653  ;;  %v652_v36 = vpop.permute.xlu0 %651 }
 0x1a2   : > { %695 = vst.msk [vmem:[%s1360_s25 + $0x1c] sm:$0xf] %vm687_vm1, %v654_v37  ;;  %694 = vst.msk [vmem:[%s1360_s25 + $0x18] sm:$0xf] %vm687_vm1, %v652_v36 }
 0x1a3   : > { %712 = vst.msk [vmem:[%s1360_s25 + $0x1c] sm:$0xf] %vm704_vm2, %v1280_v47  ;;  %711 = vst.msk [vmem:[%s1360_s25 + $0x18] sm:$0xf] %vm704_vm2, %v1277_v46 }
 0x1a5   : > { %v658_v40 = vpop.permute.xlu1 %657  ;;  %v656_v39 = vpop.permute.xlu0 %655 }
 0x1a6   : > { %697 = vst.msk [vmem:[%s1360_s25 + $0x24] sm:$0xf] %vm687_vm1, %v658_v40  ;;  %696 = vst.msk [vmem:[%s1360_s25 + $0x20] sm:$0xf] %vm687_vm1, %v656_v39 }
 0x1a7   : > { %714 = vst.msk [vmem:[%s1360_s25 + $0x24] sm:$0xf] %vm704_vm2, %v1290_v53  ;;  %713 = vst.msk [vmem:[%s1360_s25 + $0x20] sm:$0xf] %vm704_vm2, %v1287_v52 }
 0x1a9   : > { %v662_v47 = vpop.permute.xlu1 %661  ;;  %v660_v46 = vpop.permute.xlu0 %659 }
 0x1aa   : > { %699 = vst.msk [vmem:[%s1360_s25 + $0x2c] sm:$0xf] %vm687_vm1, %v662_v47  ;;  %698 = vst.msk [vmem:[%s1360_s25 + $0x28] sm:$0xf] %vm687_vm1, %v660_v46 }
 0x1ab   : > { %716 = vst.msk [vmem:[%s1360_s25 + $0x2c] sm:$0xf] %vm704_vm2, %v1300_v59  ;;  %715 = vst.msk [vmem:[%s1360_s25 + $0x28] sm:$0xf] %vm704_vm2, %v1297_v58 }
 0x1ad   : > { %v666_v53 = vpop.permute.xlu1 %665  ;;  %v664_v62 = vpop.permute.xlu0 %663 }
 0x1ae   : > { %701 = vst.msk [vmem:[%s1360_s25 + $0x34] sm:$0xf] %vm687_vm1, %v666_v53  ;;  %700 = vst.msk [vmem:[%s1360_s25 + $0x30] sm:$0xf] %vm687_vm1, %v664_v62 }
 0x1af   : > { %718 = vst.msk [vmem:[%s1360_s25 + $0x34] sm:$0xf] %vm704_vm2, %v1314_v1  ;;  %717 = vst.msk [vmem:[%s1360_s25 + $0x30] sm:$0xf] %vm704_vm2, %v1311_v0 }
 0x1b1   : > { %v670_v52 = vpop.permute.xlu1 %669  ;;  %v668_v26 = vpop.permute.xlu0 %667 }
 0x1b2   : > { %703 = vst.msk [vmem:[%s1360_s25 + $0x3c] sm:$0xf] %vm687_vm1, %v670_v52  ;;  %702 = vst.msk [vmem:[%s1360_s25 + $0x38] sm:$0xf] %vm687_vm1, %v668_v26 }
 0x1b3   : > { %720 = vst.msk [vmem:[%s1360_s25 + $0x3c] sm:$0xf] %vm704_vm2, %v1328_v11  ;;  %719 = vst.msk [vmem:[%s1360_s25 + $0x38] sm:$0xf] %vm704_vm2, %v1325_v8 }
 0x1b4   : > { %s886_s6 = smul.u32 1536, %s1018_s12  ;;  %s754_s7 = sshll.u32 %s1360_s25, 4  ;;  %s755_s7 = int_to_ptr.vmem [resolvable:$true] %s754_s7 }
 0x1b5   : > { %s1036_s16 = smov 128   ;;  %s1037_s29 = smov 192  }
 0x1b6   : > { %s737_s15 = scalar_lea.hbm %s1627_s2, %s886_s6  ;;  %896 = sst [smem:[#allocation9]] (%p1109_p9), %s1036_s16 }
 0x1b7   : > { %897 = sst [smem:[#allocation9 + $0x1]] (%p1109_p9), %s1037_s29  ;;  %s1038_s18 = smov 2  }
 0x1b8   : > { %898 = sst [smem:[#allocation9 + $0x2]] (%p1109_p9), %s1038_s18  ;;  %s1039_s20 = smov 64  }
 0x1b9   : > { %899 = sst [smem:[#allocation9 + $0x3]] (%p1109_p9), %s1039_s20  ;;  %s1040_s12 = smov 4  }
 0x1ba   : > { %900 = sst [smem:[#allocation9 + $0x4]] (%p1109_p9), %s1039_s20  ;;  %s1041_s26 = smov [#allocation8]  }
 0x1bb   : > { %901 = sst [smem:[#allocation9 + $0x5]] (%p1109_p9), %s1040_s12  ;;  %s1042_s27 = smov 0  }
 0x1bc   : > { %902 = dma.general (%p1109_p9), %s755_s7, 1024, %s737_s15, %s722_s3, %s1041_s26, [#allocation9], %s1042_s27, 0  }
 0x1bd PF: > { %s782_s28 = sand.u32 1, %s1006_s9   ;;  %p905_p2 = pnand %p873_p12, %p1116_p11 }
 0x1be   : > { %s783_s4 = scalar_lea.sflag [#allocation4], %s782_s28 }
 0x1bf   : > { %1001 = dma.done.wait (!%p905_p2), %s783_s4, 1024  }
 0x1c0   : > { %1003 = vsyncadd (!%p905_p2), %s783_s4, 4294966272  ;;  %s18_s14 = sadd.s32 1, %s1026_s14   ;;  %s1632_s9 = smov %s1010_s10 }
 0x1c1   : > { %p15_p3 = scmp.ge.s32.totalorder %s18_s14, 4   ;;  %s1633_s10 = smov %s1014_s11 }
 0x1c2   : > { %s1634_s11 = smov %s1114_s23  ;;  %s1635_s12 = smov %s1022_s13 }
 0x1c3   : > { %s1636_s13 = smov %s1638_s17  ;;  %17 = sbr.rel (!%p15_p3) target bundleno = 6 (0x6), region = 86 }
 0x1ca   :  { %788 = vsyncpa [#allocation3], 1 }
 0x1cb   :  { %790 = vsyncpa [#allocation3 + $0x1], 1 }
 0x1cc   :  { %791 = vsyncpa [#allocation4], 1 }
 0x1cd   :  { %793 = vsyncpa [#allocation4 + $0x1], 1 }

</bundles_post_ra>
